<compile_context>
chip_gen: v5e
topology: v5e:2x2
jax: 0.10.0
libtpu: 0.0.40
codegen_flags: <defaults>
</compile_context>

<pallas_src>
import functools

import jax
import jax.numpy as jnp
from jax import lax
from jax.experimental import pallas as pl
from jax.experimental.pallas import tpu as pltpu


_INV_SQRT2 = 0.7071067811865476
_SQRT_2_OVER_PI = 0.7978845608028654


def _round_up(n, m):
    return (n + m - 1) // m * m


def _gelu_exact(x):
    # nn.GELU() default: exact erf formulation (computed in f32).
    return 0.5 * x * (1.0 + lax.erf(x * _INV_SQRT2))


def _gelu_tanh(x):
    # tanh approximation: the transcendental goes to the EUP slot, which is
    # otherwise idle under the MXU-heavy body, so the epilogue is near-free.
    return 0.5 * x * (1.0 + jnp.tanh(_SQRT_2_OVER_PI * (x + 0.044715 * x * x * x)))


def classifier_kernel(x_ref,
                      w1_ref, b1_ref,
                      w2_ref, b2_ref,
                      w3_ref, b3_ref,
                      o_ref, *, exact_gelu):
    gelu = _gelu_exact if exact_gelu else _gelu_tanh
    cdt = w1_ref.dtype                       # compute dtype (bf16 or f32)
    x = x_ref[...]                           # [TB, Hp]

    # Layer 1: Linear + BatchNorm1d (folded) + GELU.  Dropout = identity (eval).
    h = jnp.dot(x, w1_ref[...], preferred_element_type=jnp.float32)
    h = gelu(h + b1_ref[...])                # f32 epilogue

    # Layer 2: Linear + BatchNorm1d (folded) + GELU.
    h = jnp.dot(h.astype(cdt), w2_ref[...], preferred_element_type=jnp.float32)
    h = gelu(h + b2_ref[...])

    # Layer 3: plain Linear.
    out = jnp.dot(h.astype(cdt), w3_ref[...], preferred_element_type=jnp.float32)
    o_ref[...] = (out + b3_ref[...]).astype(o_ref.dtype)   # lane-dense store


def _vmem_capacity_bytes():
    try:
        return int(pltpu.get_tpu_info().vmem_capacity_bytes)
    except Exception:
        return 64 * 2**20        # conservative fallback (v7x per-TC VMEM)


def _vmem_estimate(tb, hp, h2p, lp, isz, w_bufs, io_bufs):
    weights = (hp * hp + hp * h2p + h2p * lp) * isz * w_bufs   # resident weights
    biases = (hp + h2p + lp) * 4 * w_bufs                      # f32 bias rows
    io = io_bufs * tb * (hp * isz + lp * 4)                    # x (cdt) + out (f32)
    interm = 2 * tb * (hp + h2p) * 4                           # f32 intermediates + headroom
    return weights + biases + io + interm


def prepare_classifier_params(params, *, eps=1e-5, compute_dtype=jnp.bfloat16):
    """Fold BatchNorm1d (eval stats) + Linear bias into the weights and pad to
    lane-dense (128-multiple) shapes.  Do this ONCE per parameter set."""
    H = params["w1"].shape[0]
    H2 = params["w2"].shape[1]
    L = params["w3"].shape[1]

    s1 = params["bn1_gamma"] / jnp.sqrt(params["bn1_var"] + eps)
    t1 = params["bn1_beta"] - params["bn1_mean"] * s1
    s2 = params["bn2_gamma"] / jnp.sqrt(params["bn2_var"] + eps)
    t2 = params["bn2_beta"] - params["bn2_mean"] * s2
    w1f = params["w1"] * s1[None, :]
    b1f = params["b1"] * s1 + t1
    w2f = params["w2"] * s2[None, :]
    b2f = params["b2"] * s2 + t2

    Hp = max(128, _round_up(H, 128))
    H2p = max(128, _round_up(H2, 128))
    Lp = max(128, _round_up(L, 128))

    f32 = jnp.float32

    def pad2(a, r, c, dt):
        return jnp.zeros((r, c), dt).at[:a.shape[0], :a.shape[1]].set(a.astype(dt))

    def prow(v, c, dt):
        return jnp.zeros((1, c), dt).at[0, :v.shape[0]].set(v.astype(dt))

    return {
        "w1p": pad2(w1f, Hp, Hp, compute_dtype),
        "b1p": prow(b1f, Hp, f32),
        "w2p": pad2(w2f, Hp, H2p, compute_dtype),
        "b2p": prow(b2f, H2p, f32),
        "w3p": pad2(params["w3"], H2p, Lp, compute_dtype),
        "b3p": prow(params["b3"], Lp, f32),
        "dims": (H, H2, L, Hp, H2p, Lp),
        "compute_dtype": compute_dtype,
    }


def aspect_aware_classifier(x, params=None, *, prepared=None, eps=1e-5,
                            compute_dtype=jnp.bfloat16, batch_tile=None,
                            exact_gelu=None):
    """x: [B, H] float32.  Pass either raw `params` or `prepared` (hoisted)."""
    if prepared is None:
        prepared = prepare_classifier_params(params, eps=eps,
                                             compute_dtype=compute_dtype)
    compute_dtype = prepared["compute_dtype"]
    if exact_gelu is None:
        exact_gelu = jnp.dtype(compute_dtype) == jnp.dtype(jnp.float32)

    B, H = x.shape
    H_, H2, L, Hp, H2p, Lp = prepared["dims"]
    assert H == H_, "input feature dim does not match parameters"

    isz = jnp.dtype(compute_dtype).itemsize
    cap = (_vmem_capacity_bytes() * 3) // 4      # headroom for compiler scratch

    # ---- Batch tile selection (16-sublane aligned, covers f32 and bf16). -----
    if batch_tile is None:
        target = 512 if jnp.dtype(compute_dtype) == jnp.dtype(jnp.float32) else 1024
        TB = min(target, _round_up(B, 16))
        # v7x has 2 TensorCores: give the "parallel" batch axis >= 2 grid steps
        # whenever the batch is large enough to split.
        if B > 16 and _round_up(B, TB) // TB < 2:
            TB = _round_up(-(-B // 2), 16)
    else:
        TB = _round_up(batch_tile, 16)

    # Auto-shrink TB until the honest VMEM estimate fits the per-chip budget
    # (never silently clamp the request).
    while TB > 16 and _vmem_estimate(TB, Hp, H2p, Lp, isz, 1, 2) > cap:
        TB = max(16, _round_up(TB // 2, 16))
    if _vmem_estimate(TB, Hp, H2p, Lp, isz, 1, 2) > cap:
        # TODO(synk): K-tiled (emit_pipeline) fallback when resident weights
        # exceed the per-core VMEM budget.
        raise NotImplementedError(
            "resident weights do not fit in VMEM for this hidden size; "
            "K-tiled fallback not implemented")

    Bp = _round_up(B, TB)
    grid = (Bp // TB,)

    # ---- Pad x only when needed (skip the extra HBM copy when aligned). ------
    if H == Hp and Bp == B and x.dtype == jnp.dtype(compute_dtype):
        xp = x
    else:
        xp = jnp.zeros((Bp, Hp), compute_dtype).at[:B, :H].set(
            x.astype(compute_dtype))

    kernel = functools.partial(classifier_kernel, exact_gelu=exact_gelu)

    def run(single_buffer_weights):
        if single_buffer_weights:
            def const(shape):
                # Constant index_map + single buffer: weights stay VMEM-resident
                # across grid steps with no wasted second buffer.
                return pl.BlockSpec(shape, lambda i: (0, 0),
                                    pipeline_mode=pl.Buffered(1))
            w_bufs = 1
        else:
            def const(shape):
                return pl.BlockSpec(shape, lambda i: (0, 0))
            w_bufs = 2
        est = _vmem_estimate(TB, Hp, H2p, Lp, isz, w_bufs, 2)
        vmem_limit = int(min(max(est + (8 << 20), 16 << 20), cap))
        return pl.pallas_call(
            kernel,
            out_shape=jax.ShapeDtypeStruct((Bp, Lp), jnp.float32),
            grid=grid,
            in_specs=[
                pl.BlockSpec((TB, Hp), lambda i: (i, 0)),   # x: batch-tiled
                const((Hp, Hp)),                            # w1 (BN folded)
                const((1, Hp)),                             # b1 (BN folded)
                const((Hp, H2p)),                           # w2 (BN folded)
                const((1, H2p)),                            # b2 (BN folded)
                const((H2p, Lp)),                           # w3
                const((1, Lp)),                             # b3
            ],
            out_specs=pl.BlockSpec((TB, Lp), lambda i: (i, 0)),
            compiler_params=pltpu.CompilerParams(
                dimension_semantics=("parallel",),
                vmem_limit_bytes=vmem_limit,
            ),
        )(xp, prepared["w1p"], prepared["b1p"],
          prepared["w2p"], prepared["b2p"],
          prepared["w3p"], prepared["b3p"])

    try:
        out = run(True)        # single-buffered resident weights (preferred)
    except Exception:          # fallback if pipeline_mode=Buffered(1) rejected
        out = run(False)

    return out[:B, :L]


def build_params(key, hidden_size, num_label):
    h2 = hidden_size // 2
    ks = jax.random.split(key, 9)
    scale = lambda fan_in: 1.0 / jnp.sqrt(jnp.float32(fan_in))
    return {
        # Linear weights stored [in, out] (transpose of PyTorch's [out, in]).
        "w1": jax.random.normal(ks[0], (hidden_size, hidden_size), jnp.float32) * scale(hidden_size),
        "b1": jax.random.normal(ks[1], (hidden_size,), jnp.float32) * 0.01,
        "w2": jax.random.normal(ks[2], (hidden_size, h2), jnp.float32) * scale(hidden_size),
        "b2": jax.random.normal(ks[3], (h2,), jnp.float32) * 0.01,
        "w3": jax.random.normal(ks[4], (h2, num_label), jnp.float32) * scale(h2),
        "b3": jax.random.normal(ks[5], (num_label,), jnp.float32) * 0.01,
        # BatchNorm1d parameters + running stats (deterministic, non-trivial).
        "bn1_gamma": 1.0 + 0.1 * jax.random.normal(ks[6], (hidden_size,), jnp.float32),
        "bn1_beta": 0.05 * jnp.arange(hidden_size, dtype=jnp.float32),
        "bn1_mean": 0.1 * jax.random.normal(ks[7], (hidden_size,), jnp.float32),
        "bn1_var": jnp.abs(1.0 + 0.1 * jax.random.normal(ks[8], (hidden_size,), jnp.float32)),
        "bn2_gamma": jnp.linspace(0.9, 1.1, h2, dtype=jnp.float32),
        "bn2_beta": jnp.linspace(-0.1, 0.1, h2, dtype=jnp.float32),
        "bn2_mean": jnp.linspace(-0.05, 0.05, h2, dtype=jnp.float32),
        "bn2_var": jnp.linspace(0.8, 1.2, h2, dtype=jnp.float32),
    }


def reference_forward(x, params, eps=1e-5):
    s1 = params["bn1_gamma"] / jnp.sqrt(params["bn1_var"] + eps)
    t1 = params["bn1_beta"] - params["bn1_mean"] * s1
    s2 = params["bn2_gamma"] / jnp.sqrt(params["bn2_var"] + eps)
    t2 = params["bn2_beta"] - params["bn2_mean"] * s2
    h = x @ params["w1"] + params["b1"]
    h = jax.nn.gelu(h * s1 + t1, approximate=False)
    h = h @ params["w2"] + params["b2"]
    h = jax.nn.gelu(h * s2 + t2, approximate=False)
    return h @ params["w3"] + params["b3"]


if __name__ == "__main__":
    B, HIDDEN, NUM_LABEL = 8, 32, 3
    key = jax.random.PRNGKey(0)
    k_x, k_p = jax.random.split(key)
    x = jax.random.normal(k_x, (B, HIDDEN), jnp.float32)
    params = build_params(k_p, HIDDEN, NUM_LABEL)

    ref = reference_forward(x, params)

    # f32 operands + exact-erf GELU: tight tolerance vs the exact reference.
    # (Params prepared once and reused — the BN fold / padding is hoisted.)
    prep_f32 = prepare_classifier_params(params, compute_dtype=jnp.float32)
    out_f32 = jax.block_until_ready(aspect_aware_classifier(x, prepared=prep_f32))
    assert out_f32.shape == (B, NUM_LABEL)
    assert jnp.allclose(out_f32, ref, atol=1e-4, rtol=1e-4), "f32 mismatch vs reference"

    # Default path: bf16 operands (f32 MXU accumulation, f32 epilogue) with
    # tanh-GELU on the EUP: loose tolerance (input/weight quantization).
    out_bf16 = jax.block_until_ready(aspect_aware_classifier(x, params))
    assert out_bf16.shape == (B, NUM_LABEL)
    assert jnp.allclose(out_bf16, ref, atol=1e-1, rtol=1e-1), "bf16 mismatch vs reference"

    print("KERNEL_OK")
</pallas_src>

<mosaic_0001>
module attributes {stable_mosaic.version = 11 : i64} {
  func.func @classifier_kernel(%arg0: i32, %arg1: memref<16x128xf32, #tpu.memory_space<vmem>>, %arg2: memref<128x128xf32, #tpu.memory_space<vmem>>, %arg3: memref<1x128xf32, #tpu.memory_space<vmem>>, %arg4: memref<128x128xf32, #tpu.memory_space<vmem>>, %arg5: memref<1x128xf32, #tpu.memory_space<vmem>>, %arg6: memref<128x128xf32, #tpu.memory_space<vmem>>, %arg7: memref<1x128xf32, #tpu.memory_space<vmem>>, %arg8: memref<16x128xf32, #tpu.memory_space<vmem>>) attributes {dimension_semantics = [#tpu.dimension_semantics<parallel>], iteration_bounds = array<i64: 1>, scalar_prefetch = 0 : i64, scratch_operands = 0 : i64, tpu.core_type = #tpu.core_type<tc>, window_params = [{transform_indices = @transform_0, window_bounds = array<i64: 16, 128>}, {pipeline_mode = #tpu.pipeline_mode<synchronous>, transform_indices = @transform_1, window_bounds = array<i64: 128, 128>}, {pipeline_mode = #tpu.pipeline_mode<synchronous>, transform_indices = @transform_2, window_bounds = array<i64: 1, 128>}, {pipeline_mode = #tpu.pipeline_mode<synchronous>, transform_indices = @transform_3, window_bounds = array<i64: 128, 128>}, {pipeline_mode = #tpu.pipeline_mode<synchronous>, transform_indices = @transform_4, window_bounds = array<i64: 1, 128>}, {pipeline_mode = #tpu.pipeline_mode<synchronous>, transform_indices = @transform_5, window_bounds = array<i64: 128, 128>}, {pipeline_mode = #tpu.pipeline_mode<synchronous>, transform_indices = @transform_6, window_bounds = array<i64: 1, 128>}, {transform_indices = @transform_7, window_bounds = array<i64: 16, 128>}]} {
    %c0 = arith.constant 0 : index
    %c0_0 = arith.constant 0 : index
    %0 = vector.load %arg1[%c0, %c0_0] : memref<16x128xf32, #tpu.memory_space<vmem>>, vector<16x128xf32>
    %c0_1 = arith.constant 0 : index
    %c0_2 = arith.constant 0 : index
    %1 = vector.load %arg2[%c0_1, %c0_2] : memref<128x128xf32, #tpu.memory_space<vmem>>, vector<128x128xf32>
    %cst = arith.constant dense<0.000000e+00> : vector<16x128xf32>
    %2 = tpu.matmul %0, %1, %cst {dimension_numbers = #tpu.dot_dimension_numbers<[1], [0], [0], [1], [0, 0, 1, 1], [], []>} : vector<16x128xf32>, vector<128x128xf32>, vector<16x128xf32> -> vector<16x128xf32>
    %c0_3 = arith.constant 0 : index
    %c0_4 = arith.constant 0 : index
    %3 = vector.load %arg3[%c0_3, %c0_4] : memref<1x128xf32, #tpu.memory_space<vmem>>, vector<1x128xf32>
    %4 = vector.broadcast %3 : vector<1x128xf32> to vector<16x128xf32>
    %5 = arith.addf %2, %4 : vector<16x128xf32>
    %cst_5 = arith.constant 5.000000e-01 : f32
    %6 = vector.broadcast %cst_5 : f32 to vector<16x128xf32>
    %7 = arith.mulf %6, %5 : vector<16x128xf32>
    %cst_6 = arith.constant 0.707106769 : f32
    %8 = vector.broadcast %cst_6 : f32 to vector<16x128xf32>
    %9 = arith.mulf %5, %8 : vector<16x128xf32>
    %10 = math.erf %9 : vector<16x128xf32>
    %cst_7 = arith.constant 1.000000e+00 : f32
    %11 = vector.broadcast %cst_7 : f32 to vector<16x128xf32>
    %12 = arith.addf %11, %10 : vector<16x128xf32>
    %13 = arith.mulf %7, %12 : vector<16x128xf32>
    %c0_8 = arith.constant 0 : index
    %c0_9 = arith.constant 0 : index
    %14 = vector.load %arg4[%c0_8, %c0_9] : memref<128x128xf32, #tpu.memory_space<vmem>>, vector<128x128xf32>
    %cst_10 = arith.constant dense<0.000000e+00> : vector<16x128xf32>
    %15 = tpu.matmul %13, %14, %cst_10 {dimension_numbers = #tpu.dot_dimension_numbers<[1], [0], [0], [1], [0, 0, 1, 1], [], []>} : vector<16x128xf32>, vector<128x128xf32>, vector<16x128xf32> -> vector<16x128xf32>
    %c0_11 = arith.constant 0 : index
    %c0_12 = arith.constant 0 : index
    %16 = vector.load %arg5[%c0_11, %c0_12] : memref<1x128xf32, #tpu.memory_space<vmem>>, vector<1x128xf32>
    %17 = vector.broadcast %16 : vector<1x128xf32> to vector<16x128xf32>
    %18 = arith.addf %15, %17 : vector<16x128xf32>
    %cst_13 = arith.constant 5.000000e-01 : f32
    %19 = vector.broadcast %cst_13 : f32 to vector<16x128xf32>
    %20 = arith.mulf %19, %18 : vector<16x128xf32>
    %cst_14 = arith.constant 0.707106769 : f32
    %21 = vector.broadcast %cst_14 : f32 to vector<16x128xf32>
    %22 = arith.mulf %18, %21 : vector<16x128xf32>
    %23 = math.erf %22 : vector<16x128xf32>
    %cst_15 = arith.constant 1.000000e+00 : f32
    %24 = vector.broadcast %cst_15 : f32 to vector<16x128xf32>
    %25 = arith.addf %24, %23 : vector<16x128xf32>
    %26 = arith.mulf %20, %25 : vector<16x128xf32>
    %c0_16 = arith.constant 0 : index
    %c0_17 = arith.constant 0 : index
    %27 = vector.load %arg6[%c0_16, %c0_17] : memref<128x128xf32, #tpu.memory_space<vmem>>, vector<128x128xf32>
    %cst_18 = arith.constant dense<0.000000e+00> : vector<16x128xf32>
    %28 = tpu.matmul %26, %27, %cst_18 {dimension_numbers = #tpu.dot_dimension_numbers<[1], [0], [0], [1], [0, 0, 1, 1], [], []>} : vector<16x128xf32>, vector<128x128xf32>, vector<16x128xf32> -> vector<16x128xf32>
    %c0_19 = arith.constant 0 : index
    %c0_20 = arith.constant 0 : index
    %29 = vector.load %arg7[%c0_19, %c0_20] : memref<1x128xf32, #tpu.memory_space<vmem>>, vector<1x128xf32>
    %30 = vector.broadcast %29 : vector<1x128xf32> to vector<16x128xf32>
    %31 = arith.addf %28, %30 : vector<16x128xf32>
    %c0_21 = arith.constant 0 : index
    %c0_22 = arith.constant 0 : index
    %32 = vector.load %arg8[%c0_21, %c0_22] : memref<16x128xf32, #tpu.memory_space<vmem>>, vector<16x128xf32>
    tpu.vector_store %arg8[%c0_21, %c0_22], %31 {strides = array<i32>} : memref<16x128xf32, #tpu.memory_space<vmem>>, vector<16x128xf32>,
    return
  }
  func.func @transform_0(%arg0: i32) -> (i32, i32) {
    %c0_i32 = arith.constant 0 : i32
    %c0_i32_0 = arith.constant 0 : i32
    return %arg0, %c0_i32 : i32, i32
  }
  func.func @transform_1(%arg0: i32) -> (i32, i32) {
    %c0_i32 = arith.constant 0 : i32
    %c0_i32_0 = arith.constant 0 : i32
    %c0_i32_1 = arith.constant 0 : i32
    return %c0_i32, %c0_i32_0 : i32, i32
  }
  func.func @transform_2(%arg0: i32) -> (i32, i32) {
    %c0_i32 = arith.constant 0 : i32
    %c0_i32_0 = arith.constant 0 : i32
    %c0_i32_1 = arith.constant 0 : i32
    return %c0_i32, %c0_i32_0 : i32, i32
  }
  func.func @transform_3(%arg0: i32) -> (i32, i32) {
    %c0_i32 = arith.constant 0 : i32
    %c0_i32_0 = arith.constant 0 : i32
    %c0_i32_1 = arith.constant 0 : i32
    return %c0_i32, %c0_i32_0 : i32, i32
  }
  func.func @transform_4(%arg0: i32) -> (i32, i32) {
    %c0_i32 = arith.constant 0 : i32
    %c0_i32_0 = arith.constant 0 : i32
    %c0_i32_1 = arith.constant 0 : i32
    return %c0_i32, %c0_i32_0 : i32, i32
  }
  func.func @transform_5(%arg0: i32) -> (i32, i32) {
    %c0_i32 = arith.constant 0 : i32
    %c0_i32_0 = arith.constant 0 : i32
    %c0_i32_1 = arith.constant 0 : i32
    return %c0_i32, %c0_i32_0 : i32, i32
  }
  func.func @transform_6(%arg0: i32) -> (i32, i32) {
    %c0_i32 = arith.constant 0 : i32
    %c0_i32_0 = arith.constant 0 : i32
    %c0_i32_1 = arith.constant 0 : i32
    return %c0_i32, %c0_i32_0 : i32, i32
  }
  func.func @transform_7(%arg0: i32) -> (i32, i32) {
    %c0_i32 = arith.constant 0 : i32
    %c0_i32_0 = arith.constant 0 : i32
    return %arg0, %c0_i32 : i32, i32
  }
}

module attributes {stable_mosaic.version = 11 : i64} {
  func.func @classifier_kernel(%arg0: i32, %arg1: memref<16x128xf32, #tpu.memory_space<vmem>>, %arg2: memref<128x128xf32, #tpu.memory_space<vmem>>, %arg3: memref<1x128xf32, #tpu.memory_space<vmem>>, %arg4: memref<128x128xf32, #tpu.memory_space<vmem>>, %arg5: memref<1x128xf32, #tpu.memory_space<vmem>>, %arg6: memref<128x128xf32, #tpu.memory_space<vmem>>, %arg7: memref<1x128xf32, #tpu.memory_space<vmem>>, %arg8: memref<16x128xf32, #tpu.memory_space<vmem>>) attributes {dimension_semantics = [#tpu.dimension_semantics<parallel>], iteration_bounds = array<i64: 1>, scalar_prefetch = 0 : i64, scratch_operands = 0 : i64, tpu.core_type = #tpu.core_type<tc>, window_params = [{transform_indices = @transform_0, window_bounds = array<i64: 16, 128>}, {pipeline_mode = #tpu.pipeline_mode<synchronous>, transform_indices = @transform_1, window_bounds = array<i64: 128, 128>}, {pipeline_mode = #tpu.pipeline_mode<synchronous>, transform_indices = @transform_2, window_bounds = array<i64: 1, 128>}, {pipeline_mode = #tpu.pipeline_mode<synchronous>, transform_indices = @transform_3, window_bounds = array<i64: 128, 128>}, {pipeline_mode = #tpu.pipeline_mode<synchronous>, transform_indices = @transform_4, window_bounds = array<i64: 1, 128>}, {pipeline_mode = #tpu.pipeline_mode<synchronous>, transform_indices = @transform_5, window_bounds = array<i64: 128, 128>}, {pipeline_mode = #tpu.pipeline_mode<synchronous>, transform_indices = @transform_6, window_bounds = array<i64: 1, 128>}, {transform_indices = @transform_7, window_bounds = array<i64: 16, 128>}]} {
    %c0 = arith.constant 0 : index
    %c0_0 = arith.constant 0 : index
    %0 = vector.load %arg1[%c0, %c0_0] : memref<16x128xf32, #tpu.memory_space<vmem>>, vector<16x128xf32>
    %c0_1 = arith.constant 0 : index
    %c0_2 = arith.constant 0 : index
    %1 = vector.load %arg2[%c0_1, %c0_2] : memref<128x128xf32, #tpu.memory_space<vmem>>, vector<128x128xf32>
    %cst = arith.constant dense<0.000000e+00> : vector<16x128xf32>
    %2 = tpu.matmul %0, %1, %cst {dimension_numbers = #tpu.dot_dimension_numbers<[1], [0], [0], [1], [0, 0, 1, 1], [], []>} : vector<16x128xf32>, vector<128x128xf32>, vector<16x128xf32> -> vector<16x128xf32>
    %c0_3 = arith.constant 0 : index
    %c0_4 = arith.constant 0 : index
    %3 = vector.load %arg3[%c0_3, %c0_4] : memref<1x128xf32, #tpu.memory_space<vmem>>, vector<1x128xf32>
    %4 = vector.broadcast %3 : vector<1x128xf32> to vector<16x128xf32>
    %5 = arith.addf %2, %4 : vector<16x128xf32>
    %cst_5 = arith.constant 5.000000e-01 : f32
    %6 = vector.broadcast %cst_5 : f32 to vector<16x128xf32>
    %7 = arith.mulf %6, %5 : vector<16x128xf32>
    %cst_6 = arith.constant 0.707106769 : f32
    %8 = vector.broadcast %cst_6 : f32 to vector<16x128xf32>
    %9 = arith.mulf %5, %8 : vector<16x128xf32>
    %10 = math.erf %9 : vector<16x128xf32>
    %cst_7 = arith.constant 1.000000e+00 : f32
    %11 = vector.broadcast %cst_7 : f32 to vector<16x128xf32>
    %12 = arith.addf %11, %10 : vector<16x128xf32>
    %13 = arith.mulf %7, %12 : vector<16x128xf32>
    %c0_8 = arith.constant 0 : index
    %c0_9 = arith.constant 0 : index
    %14 = vector.load %arg4[%c0_8, %c0_9] : memref<128x128xf32, #tpu.memory_space<vmem>>, vector<128x128xf32>
    %cst_10 = arith.constant dense<0.000000e+00> : vector<16x128xf32>
    %15 = tpu.matmul %13, %14, %cst_10 {dimension_numbers = #tpu.dot_dimension_numbers<[1], [0], [0], [1], [0, 0, 1, 1], [], []>} : vector<16x128xf32>, vector<128x128xf32>, vector<16x128xf32> -> vector<16x128xf32>
    %c0_11 = arith.constant 0 : index
    %c0_12 = arith.constant 0 : index
    %16 = vector.load %arg5[%c0_11, %c0_12] : memref<1x128xf32, #tpu.memory_space<vmem>>, vector<1x128xf32>
    %17 = vector.broadcast %16 : vector<1x128xf32> to vector<16x128xf32>
    %18 = arith.addf %15, %17 : vector<16x128xf32>
    %cst_13 = arith.constant 5.000000e-01 : f32
    %19 = vector.broadcast %cst_13 : f32 to vector<16x128xf32>
    %20 = arith.mulf %19, %18 : vector<16x128xf32>
    %cst_14 = arith.constant 0.707106769 : f32
    %21 = vector.broadcast %cst_14 : f32 to vector<16x128xf32>
    %22 = arith.mulf %18, %21 : vector<16x128xf32>
    %23 = math.erf %22 : vector<16x128xf32>
    %cst_15 = arith.constant 1.000000e+00 : f32
    %24 = vector.broadcast %cst_15 : f32 to vector<16x128xf32>
    %25 = arith.addf %24, %23 : vector<16x128xf32>
    %26 = arith.mulf %20, %25 : vector<16x128xf32>
    %c0_16 = arith.constant 0 : index
    %c0_17 = arith.constant 0 : index
    %27 = vector.load %arg6[%c0_16, %c0_17] : memref<128x128xf32, #tpu.memory_space<vmem>>, vector<128x128xf32>
    %cst_18 = arith.constant dense<0.000000e+00> : vector<16x128xf32>
    %28 = tpu.matmul %26, %27, %cst_18 {dimension_numbers = #tpu.dot_dimension_numbers<[1], [0], [0], [1], [0, 0, 1, 1], [], []>} : vector<16x128xf32>, vector<128x128xf32>, vector<16x128xf32> -> vector<16x128xf32>
    %c0_19 = arith.constant 0 : index
    %c0_20 = arith.constant 0 : index
    %29 = vector.load %arg7[%c0_19, %c0_20] : memref<1x128xf32, #tpu.memory_space<vmem>>, vector<1x128xf32>
    %30 = vector.broadcast %29 : vector<1x128xf32> to vector<16x128xf32>
    %31 = arith.addf %28, %30 : vector<16x128xf32>
    %c0_21 = arith.constant 0 : index
    %c0_22 = arith.constant 0 : index
    %32 = vector.load %arg8[%c0_21, %c0_22] : memref<16x128xf32, #tpu.memory_space<vmem>>, vector<16x128xf32>
    tpu.vector_store %arg8[%c0_21, %c0_22], %31 {strides = array<i32>} : memref<16x128xf32, #tpu.memory_space<vmem>>, vector<16x128xf32>,
    return
  }
  func.func @transform_0(%arg0: i32) -> (i32, i32) {
    %c0_i32 = arith.constant 0 : i32
    %c0_i32_0 = arith.constant 0 : i32
    return %arg0, %c0_i32 : i32, i32
  }
  func.func @transform_1(%arg0: i32) -> (i32, i32) {
    %c0_i32 = arith.constant 0 : i32
    %c0_i32_0 = arith.constant 0 : i32
    %c0_i32_1 = arith.constant 0 : i32
    return %c0_i32, %c0_i32_0 : i32, i32
  }
  func.func @transform_2(%arg0: i32) -> (i32, i32) {
    %c0_i32 = arith.constant 0 : i32
    %c0_i32_0 = arith.constant 0 : i32
    %c0_i32_1 = arith.constant 0 : i32
    return %c0_i32, %c0_i32_0 : i32, i32
  }
  func.func @transform_3(%arg0: i32) -> (i32, i32) {
    %c0_i32 = arith.constant 0 : i32
    %c0_i32_0 = arith.constant 0 : i32
    %c0_i32_1 = arith.constant 0 : i32
    return %c0_i32, %c0_i32_0 : i32, i32
  }
  func.func @transform_4(%arg0: i32) -> (i32, i32) {
    %c0_i32 = arith.constant 0 : i32
    %c0_i32_0 = arith.constant 0 : i32
    %c0_i32_1 = arith.constant 0 : i32
    return %c0_i32, %c0_i32_0 : i32, i32
  }
  func.func @transform_5(%arg0: i32) -> (i32, i32) {
    %c0_i32 = arith.constant 0 : i32
    %c0_i32_0 = arith.constant 0 : i32
    %c0_i32_1 = arith.constant 0 : i32
    return %c0_i32, %c0_i32_0 : i32, i32
  }
  func.func @transform_6(%arg0: i32) -> (i32, i32) {
    %c0_i32 = arith.constant 0 : i32
    %c0_i32_0 = arith.constant 0 : i32
    %c0_i32_1 = arith.constant 0 : i32
    return %c0_i32, %c0_i32_0 : i32, i32
  }
  func.func @transform_7(%arg0: i32) -> (i32, i32) {
    %c0_i32 = arith.constant 0 : i32
    %c0_i32_0 = arith.constant 0 : i32
    return %arg0, %c0_i32 : i32, i32
  }
}

</mosaic_0001>

<bundles_post_ra>
// kernel: tpu_custom_call.1
= control target key start
LH: loop header
LB: loop body
LE: loop exit
PB: predicated region body
PF: predicated region fallthrough
CT: control target
= control target key end

     0   :  { %12 = vsyncpa [#allocation3], 0  ;;  %s708_s0 = inlined_call_operand.hbm [shape: f32[16,128], index: 0, kind: input, shape index: {}]   ;;  %s709_s1 = inlined_call_operand.hbm [shape: f32[128,128], index: 1, kind: input, shape index: {}]   ;;  %s710_s2 = inlined_call_operand.vmem [shape: f32[1,128], index: 2, kind: input, shape index: {}]   ;;  %s711_s3 = inlined_call_operand.hbm [shape: f32[128,128], index: 3, kind: input, shape index: {}]   ;;  %s712_s4 = inlined_call_operand.vmem [shape: f32[1,128], index: 4, kind: input, shape index: {}]   ;;  %s713_s5 = inlined_call_operand.hbm [shape: f32[128,128], index: 5, kind: input, shape index: {}]   ;;  %s714_s6 = inlined_call_operand.vmem [shape: f32[1,128], index: 6, kind: input, shape index: {}]   ;;  %s715_s7 = inlined_call_operand.hbm [shape: f32[16,128], index: 7, kind: output, shape index: {}]  }
   0x1   :  { %13 = vsyncpa [#allocation6], 0 }
   0x2   :  { %14 = vsyncpa [#allocation9], 0 }
   0x3   :  { %15 = vsyncpa [#allocation4], 0  ;;  %s33_s26 = sshll.u32 %s709_s1, 4  ;;  %s586_s27 = smov [#allocation5]   ;;  %s34_s26 = int_to_ptr.hbm [resolvable:$true] %s33_s26 }
   0x4   :  { %s35_s28 = sshll.u32 %s586_s27, 4  ;;  %s20_s8 = sshll.u32 %s708_s0, 4  ;;  %s36_s28 = int_to_ptr.vmem [resolvable:$true] %s35_s28  ;;  %s21_s8 = int_to_ptr.hbm [resolvable:$true] %s20_s8 }
   0x5   :  { %s587_s9 = smov 128   ;;  %s588_s10 = smov 8  }
   0x6   :  { %41 = dma.hbm_to_vmem [thread:$0]  %s34_s26, 2048, %s36_s28, [#allocation6], %s587_s9, %s587_s9, %s588_s10  }
   0x7   :  { %s589_s11 = smov [#allocation2]   ;;  %s48_s1 = sshll.u32 %s711_s3, 4  ;;  %s49_s1 = int_to_ptr.hbm [resolvable:$true] %s48_s1 }
   0x8   :  { %s22_s12 = sshll.u32 %s589_s11, 4  ;;  %s63_s16 = sshll.u32 %s713_s5, 4  ;;  %s23_s12 = int_to_ptr.vmem [resolvable:$true] %s22_s12  ;;  %s64_s16 = int_to_ptr.hbm [resolvable:$true] %s63_s16 }
   0x9   :  { %28 = dma.hbm_to_vmem [thread:$0]  %s21_s8, 256, %s23_s12, [#allocation3], %s587_s9, %s587_s9, %s588_s10  }
   0xa   :  { %s590_s17 = smov [#allocation7]   ;;  %s591_s19 = smov [#allocation8]  }
   0xb   :  { %s50_s18 = sshll.u32 %s590_s17, 4  ;;  %s65_s3 = sshll.u32 %s591_s19, 4  ;;  %s51_s18 = int_to_ptr.vmem [resolvable:$true] %s50_s18  ;;  %s66_s3 = int_to_ptr.vmem [resolvable:$true] %s65_s3 }
   0xc   :  { %56 = dma.hbm_to_vmem [thread:$0]  %s49_s1, 2048, %s51_s18, [#allocation6], %s587_s9, %s587_s9, %s588_s10  }
   0xd   :  { %71 = dma.hbm_to_vmem [thread:$0]  %s64_s16, 2048, %s66_s3, [#allocation9], %s587_s9, %s587_s9, %s588_s10  }
   0xe   :  { %578 = dma.done.wait [#allocation3], 256  }
   0xf   :  { %579 = vsyncadd [#allocation3], 4294967040 }
  0x10   :  { %580 = dma.done.wait [#allocation6], 4096  }
  0x11   :  { %581 = vsyncadd [#allocation6], 4294963200 }
  0x12   :  { %582 = dma.done.wait [#allocation9], 2048  }
  0x13   :  { %583 = vsyncadd [#allocation9], 4294965248  ;;  %v107_v0 = vld [vmem:[#allocation5 + $0x78] sm:$0xff]  ;;  %v106_v1 = vld [vmem:[#allocation5 + $0x70] sm:$0xff]  ;;  %s592_s23 = smov [#allocation10]   ;;  %s405_s27 = sshll.u32 %s715_s7, 4  ;;  %s406_s27 = int_to_ptr.hbm [resolvable:$true] %s405_s27 }
  0x14   :  { %112 = vmatpush.msra.mxu0 %v107_v0  ;;  %424 = vmatpush.msra.mxu3 %v107_v0  ;;  %v105_v2 = vld [vmem:[#allocation5 + $0x68] sm:$0xff]  ;;  %v104_v3 = vld [vmem:[#allocation5 + $0x60] sm:$0xff]  ;;  %v103_v4 = vld [vmem:[#allocation5 + $0x58] sm:$0xff]  ;;  %s403_s24 = sshll.u32 %s592_s23, 4  ;;  %s404_s24 = int_to_ptr.vmem [resolvable:$true] %s403_s24 }
  0x15   :  { %v102_v5 = vld [vmem:[#allocation5 + $0x50] sm:$0xff]  ;;  %v101_v6 = vld [vmem:[#allocation5 + $0x48] sm:$0xff]  ;;  %v100_v7 = vld [vmem:[#allocation5 + $0x40] sm:$0xff] }
  0x16   :  { %113 = vmatpush.msra.mxu0 %v106_v1  ;;  %425 = vmatpush.msra.mxu3 %v106_v1  ;;  %v99_v8 = vld [vmem:[#allocation5 + $0x38] sm:$0xff]  ;;  %v98_v9 = vld [vmem:[#allocation5 + $0x30] sm:$0xff]  ;;  %v97_v10 = vld [vmem:[#allocation5 + $0x28] sm:$0xff] }
  0x17   :  { %v96_v11 = vld [vmem:[#allocation5 + $0x20] sm:$0xff]  ;;  %v95_v12 = vld [vmem:[#allocation5 + $0x18] sm:$0xff]  ;;  %v94_v13 = vld [vmem:[#allocation5 + $0x10] sm:$0xff] }
  0x18   :  { %114 = vmatpush.msra.mxu0 %v105_v2  ;;  %426 = vmatpush.msra.mxu3 %v105_v2  ;;  %v93_v14 = vld [vmem:[#allocation5 + $0x8] sm:$0xff]  ;;  %v92_v15 = vld [vmem:[#allocation5] sm:$0xff]  ;;  %v90_v16 = vld [vmem:[#allocation2] sm:$0xff] }
  0x19   :  { %v91_v17 = vld [vmem:[#allocation2 + $0x8] sm:$0xff]  ;;  %v237_v19 = vld [vmem:[#allocation7 + $0x70] sm:$0xff]  ;;  %v236_v20 = vld [vmem:[#allocation7 + $0x68] sm:$0xff] }
  0x1a   :  { %115 = vmatpush.msra.mxu0 %v104_v3  ;;  %427 = vmatpush.msra.mxu3 %v104_v3  ;;  %v238_v18 = vld [vmem:[#allocation7 + $0x78] sm:$0xff]  ;;  %v235_v21 = vld [vmem:[#allocation7 + $0x60] sm:$0xff]  ;;  %v447_v22 = vld [vmem:[%s710_s2] ss:$0 sm:$0xff] }
  0x1b   :  { %243 = vmatpush.msra.mxu1 %v238_v18  ;;  %v234_v23 = vld [vmem:[#allocation7 + $0x58] sm:$0xff]  ;;  %v233_v25 = vld [vmem:[#allocation7 + $0x50] sm:$0xff]  ;;  %v232_v27 = vld [vmem:[#allocation7 + $0x48] sm:$0xff] }
  0x1c   :  { %116 = vmatpush.msra.mxu0 %v103_v4  ;;  %428 = vmatpush.msra.mxu3 %v103_v4  ;;  %v231_v29 = vld [vmem:[#allocation7 + $0x40] sm:$0xff]  ;;  %v230_v30 = vld [vmem:[#allocation7 + $0x38] sm:$0xff]  ;;  %v229_v33 = vld [vmem:[#allocation7 + $0x30] sm:$0xff] }
  0x1d   :  { %244 = vmatpush.msra.mxu1 %v237_v19  ;;  %v228_v36 = vld [vmem:[#allocation7 + $0x28] sm:$0xff]  ;;  %v227_v39 = vld [vmem:[#allocation7 + $0x20] sm:$0xff]  ;;  %v226_v43 = vld [vmem:[#allocation7 + $0x18] sm:$0xff] }
  0x1e   :  { %117 = vmatpush.msra.mxu0 %v102_v5  ;;  %429 = vmatpush.msra.mxu3 %v102_v5  ;;  %v225_v47 = vld [vmem:[#allocation7 + $0x10] sm:$0xff]  ;;  %v224_v52 = vld [vmem:[#allocation7 + $0x8] sm:$0xff]  ;;  %v223_v56 = vld [vmem:[#allocation7] sm:$0xff] }
  0x1f   :  { %245 = vmatpush.msra.mxu1 %v236_v20 }
  0x20   :  { %118 = vmatpush.msra.mxu0 %v101_v6  ;;  %430 = vmatpush.msra.mxu3 %v101_v6 }
  0x21   :  { %246 = vmatpush.msra.mxu1 %v235_v21 }
  0x22   :  { %119 = vmatpush.msra.mxu0 %v100_v7  ;;  %431 = vmatpush.msra.mxu3 %v100_v7 }
  0x23   :  { %247 = vmatpush.msra.mxu1 %v234_v23 }
  0x24   :  { %120 = vmatpush.msra.mxu0 %v99_v8  ;;  %432 = vmatpush.msra.mxu3 %v99_v8 }
  0x25   :  { %248 = vmatpush.msra.mxu1 %v233_v25 }
  0x26   :  { %121 = vmatpush.msra.mxu0 %v98_v9  ;;  %433 = vmatpush.msra.mxu3 %v98_v9 }
  0x27   :  { %249 = vmatpush.msra.mxu1 %v232_v27 }
  0x28   :  { %122 = vmatpush.msra.mxu0 %v97_v10  ;;  %434 = vmatpush.msra.mxu3 %v97_v10 }
  0x29   :  { %250 = vmatpush.msra.mxu1 %v231_v29 }
  0x2a   :  { %123 = vmatpush.msra.mxu0 %v96_v11  ;;  %435 = vmatpush.msra.mxu3 %v96_v11 }
  0x2b   :  { %251 = vmatpush.msra.mxu1 %v230_v30 }
  0x2c   :  { %124 = vmatpush.msra.mxu0 %v95_v12  ;;  %436 = vmatpush.msra.mxu3 %v95_v12 }
  0x2d   :  { %252 = vmatpush.msra.mxu1 %v229_v33 }
  0x2e   :  { %125 = vmatpush.msra.mxu0 %v94_v13  ;;  %437 = vmatpush.msra.mxu3 %v94_v13 }
  0x2f   :  { %253 = vmatpush.msra.mxu1 %v228_v36 }
  0x30   :  { %126 = vmatpush.msra.mxu0 %v93_v14  ;;  %438 = vmatpush.msra.mxu3 %v93_v14 }
  0x31   :  { %254 = vmatpush.msra.mxu1 %v227_v39 }
  0x32   :  { %127 = vmatpush.msra.mxu0 %v92_v15  ;;  %439 = vmatpush.msra.mxu3 %v92_v15 }
  0x33   :  { %128 = vmatmul.f32.vlgmr.msra.gmra.mxu0 %v90_v16  ;;  %131 = vmatmul.f32.vlgmr.msra.gmra.mxu3 %v91_v17 }
  0x34   :  { %255 = vmatpush.msra.mxu1 %v226_v43 }
  0x36   :  { %256 = vmatpush.msra.mxu1 %v225_v47 }
  0x38   :  { %257 = vmatpush.msra.mxu1 %v224_v52 }
  0x3a   :  { %258 = vmatpush.msra.mxu1 %v223_v56  ;;  %v369_v56 = vld [vmem:[#allocation8 + $0x78] sm:$0xff] }
  0x3b   :  { %374 = vmatpush.msra.mxu2 %v369_v56 }
  0xb0   :  { %v129_v24 = vpop.f32.mrf.mxu0 }
  0xb1   :  { %v660_v26 = vadd.f32 %v447_v22, %v129_v24 }
  0xb3   :  { %v663_v28 = vmul.f32 0.70710677, %v660_v26  ;;  %v135_v47 = vmul.f32 0.5, %v660_v26  ;;  %v448_v26 = vld [vmem:[%s712_s4] ss:$0 sm:$0xff] }
  0xb5   :  { %v139_v31 = vmul.f32 %v663_v28, %v663_v28 }
  0xb6   :  { %v132_v32 = vpop.f32.mrf.mxu3 }
  0xb7   :  { %v140_v34 = vmin.f32 %v139_v31, 16.0  ;;  %v667_v35 = vadd.f32 %v447_v22, %v132_v32 }
  0xb9   :  { %v141_v37 = vmul.f32 2.1237322e-06, %v140_v34  ;;  %v670_v38 = vmul.f32 0.70710677, %v667_v35  ;;  %v152_v40 = vmul.f32 3.8918573e-05, %v140_v34 }
  0xbb   :  { %v142_v41 = vadd.f32 0.00028619796, %v141_v37  ;;  %v179_v42 = vmul.f32 %v670_v38, %v670_v38  ;;  %v153_v44 = vadd.f32 0.001143296, %v152_v40 }
  0xbd   :  { %v143_v45 = vmul.f32 %v142_v41, %v140_v34  ;;  %v180_v46 = vmin.f32 %v179_v42, 16.0  ;;  %v154_v48 = vmul.f32 %v153_v44, %v140_v34 }
  0xbf   :  { %v181_v49 = vmul.f32 2.1237322e-06, %v180_v46  ;;  %v192_v50 = vmul.f32 3.8918573e-05, %v180_v46  ;;  %v144_v51 = vadd.f32 0.0036580483, %v143_v45 }
  0xc0   :  { %v155_v53 = vadd.f32 0.014752088, %v154_v48 }
  0xc1   :  { %v182_v54 = vadd.f32 0.00028619796, %v181_v49  ;;  %v193_v55 = vadd.f32 0.001143296, %v192_v50  ;;  %v145_v60 = vmul.f32 %v144_v51, %v140_v34 }
  0xc2   :  { %v156_v57 = vmul.f32 %v155_v53, %v140_v34 }
  0xc3   :  { %v183_v58 = vmul.f32 %v182_v54, %v180_v46  ;;  %v194_v59 = vmul.f32 %v193_v55, %v180_v46  ;;  %v146_v2 = vadd.f32 0.05243302, %v145_v60  ;;  %v136_v54 = vmul.f32 0.5, %v667_v35  ;;  %v363_v35 = vld [vmem:[#allocation8 + $0x48] sm:$0xff] }
  0xc4   :  { %v157_v61 = vadd.f32 0.112945676, %v156_v57  ;;  %v368_v57 = vld [vmem:[#allocation8 + $0x70] sm:$0xff] }
  0xc5   :  { %v184_v62 = vadd.f32 0.0036580483, %v183_v58  ;;  %v195_v63 = vadd.f32 0.014752088, %v194_v59  ;;  %v147_v8 = vmul.f32 %v146_v2, %v140_v34  ;;  %375 = vmatpush.msra.mxu2 %v368_v57  ;;  %v366_v58 = vld [vmem:[#allocation8 + $0x60] sm:$0xff]  ;;  %v365_v59 = vld [vmem:[#allocation8 + $0x58] sm:$0xff] }
  0xc6   :  { %v158_v0 = vmul.f32 %v157_v61, %v140_v34  ;;  %v364_v61 = vld [vmem:[#allocation8 + $0x50] sm:$0xff]  ;;  %v361_v2 = vld [vmem:[#allocation8 + $0x38] sm:$0xff] }
  0xc7   :  { %v196_v1 = vmul.f32 %v195_v63, %v180_v46  ;;  %v185_v4 = vmul.f32 %v184_v62, %v180_v46  ;;  %v148_v13 = vadd.f32 0.18741608, %v147_v8 }
  0xc8   :  { %v159_v3 = vadd.f32 0.4994258, %v158_v0  ;;  %v362_v0 = vld [vmem:[#allocation8 + $0x40] sm:$0xff] }
  0xc9   :  { %v197_v5 = vadd.f32 0.112945676, %v196_v1  ;;  %v186_v10 = vadd.f32 0.05243302, %v185_v4  ;;  %v149_v17 = vmul.f32 %v148_v13, %v140_v34  ;;  %v357_v13 = vld [vmem:[#allocation8 + $0x18] sm:$0xff] }
  0xca   :  { %v160_v6 = vmul.f32 %v159_v3, %v140_v34  ;;  %v360_v3 = vld [vmem:[#allocation8 + $0x30] sm:$0xff] }
  0xcb   :  { %v198_v7 = vmul.f32 %v197_v5, %v180_v46  ;;  %v187_v14 = vmul.f32 %v186_v10, %v180_v46  ;;  %v150_v21 = vadd.f32 1.1283791, %v149_v17  ;;  %v358_v10 = vld [vmem:[#allocation8 + $0x20] sm:$0xff]  ;;  %v356_v17 = vld [vmem:[#allocation8 + $0x10] sm:$0xff] }
  0xcc   :  { %v161_v9 = vadd.f32 1.0, %v160_v6  ;;  %v359_v6 = vld [vmem:[#allocation8 + $0x28] sm:$0xff] }
  0xcd   :  { %v199_v11 = vadd.f32 0.4994258, %v198_v7  ;;  %v188_v18 = vadd.f32 0.18741608, %v187_v14  ;;  %v151_v31 = vmul.f32 %v150_v21, %v663_v28 }
  0xce   :  { %450 = vrcp.f32 %v161_v9  ;;  %v173_v22 = vand.u32 2147483648, %v161_v9  ;;  %v171_v27 = vand.u32 2147483647, %v161_v9  ;;  %vm167_vm1 = vweird.f32 %v161_v9 }
  0xcf   :  { %v200_v12 = vmul.f32 %v199_v11, %v180_v46  ;;  %v189_v24 = vmul.f32 %v188_v18, %v180_v46 }
  0xd0   :  { %v174_v32 = vor.u32 1.1754944e-38, %v173_v22  ;;  %vm172_vm3 = vcmp.eq.f32.partialorder %v171_v27, 8.507059e+37 }
  0xd1   :  { %v201_v15 = vadd.f32 1.0, %v200_v12  ;;  %v190_v36 = vadd.f32 1.1283791, %v189_v24 }
  0xd3   :  { %452 = vrcp.f32 %v201_v15  ;;  %v213_v37 = vand.u32 2147483648, %v201_v15  ;;  %v211_v41 = vand.u32 2147483647, %v201_v15  ;;  %vm207_vm5 = vweird.f32 %v201_v15 }
  0xd4   :  { %v451_v16 = vpop.eup %450  ;;  %v191_v46 = vmul.f32 %v190_v36, %v670_v38  ;;  %v367_v38 = vld [vmem:[#allocation8 + $0x68] sm:$0xff] }
  0xd5   :  { %v163_v19 = vmul.f32 %v451_v16, %v161_v9  ;;  %vm168_vm0 = vweird.f32 %v451_v16  ;;  %v214_v45 = vor.u32 1.1754944e-38, %v213_v37  ;;  %vm212_vm7 = vcmp.eq.f32.partialorder %v211_v41, 8.507059e+37  ;;  %376 = vmatpush.msra.mxu2 %v367_v38 }
  0xd6   :  { %vm169_vm2 = vmor %vm167_vm1, %vm168_vm0 }
  0xd7   :  { %v164_v20 = vsub.f32 1.0, %v163_v19  ;;  %377 = vmatpush.msra.mxu2 %v366_v58 }
  0xd9   :  { %v453_v23 = vpop.eup %452  ;;  %v165_v25 = vmul.f32 %v451_v16, %v164_v20  ;;  %378 = vmatpush.msra.mxu2 %v365_v59  ;;  %v355_v20 = vld [vmem:[#allocation8 + $0x8] sm:$0xff] }
  0xda   :  { %v203_v29 = vmul.f32 %v453_v23, %v201_v15  ;;  %vm208_vm4 = vweird.f32 %v453_v23 }
  0xdb   :  { %v166_v30 = vadd.f32 %v451_v16, %v165_v25  ;;  %vm209_vm6 = vmor %vm207_vm5, %vm208_vm4  ;;  %379 = vmatpush.msra.mxu2 %v364_v61  ;;  %v354_v25 = vld [vmem:[#allocation8] sm:$0xff] }
  0xdc   :  { %v204_v33 = vsub.f32 1.0, %v203_v29 }
  0xdd   :  { %v170_v34 = vsel %vm169_vm2, %v451_v16, %v166_v30  ;;  %380 = vmatpush.msra.mxu2 %v363_v35 }
  0xde   :  { %v175_v39 = vsel %vm172_vm3, %v174_v32, %v170_v34  ;;  %v205_v40 = vmul.f32 %v453_v23, %v204_v33 }
  0xdf   :  { %v176_v42 = vmul.f32 %v175_v39, %v151_v31  ;;  %381 = vmatpush.msra.mxu2 %v362_v0 }
  0xe0   :  { %v206_v43 = vadd.f32 %v453_v23, %v205_v40 }
  0xe1   :  { %v420_v44 = vclamps-f32 %v176_v42, 1.0  ;;  %382 = vmatpush.msra.mxu2 %v361_v2 }
  0xe2   :  { %v210_v28 = vsel %vm209_vm6, %v453_v23, %v206_v43 }
  0xe3   :  { %v219_v48 = vadd.f32 1.0, %v420_v44  ;;  %v215_v49 = vsel %vm212_vm7, %v214_v45, %v210_v28  ;;  %383 = vmatpush.msra.mxu2 %v360_v3 }
  0xe4   :  { %v216_v50 = vmul.f32 %v215_v49, %v191_v46 }
  0xe5   :  { %v221_v51 = vmul.f32 %v219_v48, %v135_v47  ;;  %384 = vmatpush.msra.mxu2 %v359_v6 }
  0xe6   :  { %v421_v52 = vclamps-f32 %v216_v50, 1.0 }
  0xe7   :  { %259 = vmatmul.f32.vlgmr.msra.gmra.mxu1 %v221_v51  ;;  %385 = vmatpush.msra.mxu2 %v358_v10 }
  0xe8   :  { %v220_v53 = vadd.f32 1.0, %v421_v52 }
  0xe9   :  { %386 = vmatpush.msra.mxu2 %v357_v13 }
  0xea   :  { %v222_v55 = vmul.f32 %v220_v53, %v136_v54 }
  0xeb   :  { %387 = vmatpush.msra.mxu2 %v356_v17 }
  0xed   :  { %388 = vmatpush.msra.mxu2 %v355_v20 }
  0xef   :  { %262 = vmatmul.f32.gmra.mxu1 %v222_v55  ;;  %389 = vmatpush.msra.mxu2 %v354_v25 }
 0x164   :  { %v260_v60 = vpop.f32.mrf.mxu1 }
 0x165   :  { %v681_v62 = vadd.f32 %v448_v26, %v260_v60 }
 0x167   :  { %v684_v63 = vmul.f32 0.70710677, %v681_v62 }
 0x169   :  { %v270_v1 = vmul.f32 %v684_v63, %v684_v63 }
 0x16b   :  { %v271_v4 = vmin.f32 %v270_v1, 16.0 }
 0x16c   :  { %v263_v5 = vpop.f32.mrf.mxu1 }
 0x16d   :  { %v272_v7 = vmul.f32 2.1237322e-06, %v271_v4  ;;  %v688_v8 = vadd.f32 %v448_v26, %v263_v5  ;;  %v283_v9 = vmul.f32 3.8918573e-05, %v271_v4 }
 0x16f   :  { %v273_v11 = vadd.f32 0.00028619796, %v272_v7  ;;  %v691_v12 = vmul.f32 0.70710677, %v688_v8  ;;  %v284_v14 = vadd.f32 0.001143296, %v283_v9 }
 0x171   :  { %v274_v15 = vmul.f32 %v273_v11, %v271_v4  ;;  %v310_v16 = vmul.f32 %v691_v12, %v691_v12  ;;  %v285_v18 = vmul.f32 %v284_v14, %v271_v4 }
 0x173   :  { %v311_v19 = vmin.f32 %v310_v16, 16.0  ;;  %v286_v21 = vadd.f32 0.014752088, %v285_v18  ;;  %v275_v22 = vadd.f32 0.0036580483, %v274_v15  ;;  %v266_v16 = vmul.f32 0.5, %v681_v62 }
 0x174   :  { %v449_v62 = vld [vmem:[%s714_s6] ss:$0 sm:$0xff] }
 0x175   :  { %v312_v23 = vmul.f32 2.1237322e-06, %v311_v19  ;;  %v323_v24 = vmul.f32 3.8918573e-05, %v311_v19  ;;  %v287_v27 = vmul.f32 %v286_v21, %v271_v4  ;;  %v276_v32 = vmul.f32 %v275_v22, %v271_v4 }
 0x177   :  { %v313_v29 = vadd.f32 0.00028619796, %v312_v23  ;;  %v324_v30 = vadd.f32 0.001143296, %v323_v24  ;;  %v288_v31 = vadd.f32 0.112945676, %v287_v27 }
 0x178   :  { %v277_v41 = vadd.f32 0.05243302, %v276_v32  ;;  %v267_v24 = vmul.f32 0.5, %v688_v8 }
 0x179   :  { %v314_v33 = vmul.f32 %v313_v29, %v311_v19  ;;  %v325_v36 = vmul.f32 %v324_v30, %v311_v19  ;;  %v289_v34 = vmul.f32 %v288_v31, %v271_v4 }
 0x17a   :  { %v278_v28 = vmul.f32 %v277_v41, %v271_v4 }
 0x17b   :  { %v326_v37 = vadd.f32 0.014752088, %v325_v36  ;;  %v315_v39 = vadd.f32 0.0036580483, %v314_v33  ;;  %v290_v40 = vadd.f32 0.4994258, %v289_v34 }
 0x17c   :  { %v279_v50 = vadd.f32 0.18741608, %v278_v28 }
 0x17d   :  { %v327_v42 = vmul.f32 %v326_v37, %v311_v19  ;;  %v291_v43 = vmul.f32 %v290_v40, %v271_v4  ;;  %v316_v45 = vmul.f32 %v315_v39, %v311_v19 }
 0x17e   :  { %v280_v55 = vmul.f32 %v279_v50, %v271_v4 }
 0x17f   :  { %v328_v44 = vadd.f32 0.112945676, %v327_v42  ;;  %v292_v46 = vadd.f32 1.0, %v291_v43  ;;  %v317_v49 = vadd.f32 0.05243302, %v316_v45 }
 0x180   :  { %v281_v26 = vadd.f32 1.1283791, %v280_v55 }
 0x181   :  { %v329_v47 = vmul.f32 %v328_v44, %v311_v19  ;;  %454 = vrcp.f32 %v292_v46  ;;  %v318_v54 = vmul.f32 %v317_v49, %v311_v19  ;;  %v304_v58 = vand.u32 2147483648, %v292_v46 }
 0x182   :  { %v302_v60 = vand.u32 2147483647, %v292_v46  ;;  %vm298_vm9 = vweird.f32 %v292_v46  ;;  %v282_v3 = vmul.f32 %v281_v26, %v684_v63 }
 0x183   :  { %v330_v48 = vadd.f32 0.4994258, %v329_v47  ;;  %v319_v38 = vadd.f32 0.18741608, %v318_v54  ;;  %v305_v1 = vor.u32 1.1754944e-38, %v304_v58 }
 0x184   :  { %vm303_vm11 = vcmp.eq.f32.partialorder %v302_v60, 8.507059e+37 }
 0x185   :  { %v331_v51 = vmul.f32 %v330_v48, %v311_v19  ;;  %v320_v0 = vmul.f32 %v319_v38, %v311_v19 }
 0x187   :  { %v332_v52 = vadd.f32 1.0, %v331_v51  ;;  %v455_v53 = vpop.eup %454  ;;  %v321_v10 = vadd.f32 1.1283791, %v320_v0 }
 0x188   :  { %v294_v56 = vmul.f32 %v455_v53, %v292_v46  ;;  %vm299_vm8 = vweird.f32 %v455_v53 }
 0x189   :  { %456 = vrcp.f32 %v332_v52  ;;  %vm300_vm10 = vmor %vm298_vm9, %vm299_vm8  ;;  %v344_v9 = vand.u32 2147483648, %v332_v52  ;;  %v342_v13 = vand.u32 2147483647, %v332_v52  ;;  %vm338_vm13 = vweird.f32 %v332_v52 }
 0x18a   :  { %v295_v57 = vsub.f32 1.0, %v294_v56  ;;  %v322_v63 = vmul.f32 %v321_v10, %v691_v12 }
 0x18b   :  { %v345_v18 = vor.u32 1.1754944e-38, %v344_v9  ;;  %vm343_vm15 = vcmp.eq.f32.partialorder %v342_v13, 8.507059e+37 }
 0x18c   :  { %v296_v59 = vmul.f32 %v455_v53, %v295_v57 }
 0x18e   :  { %v297_v35 = vadd.f32 %v455_v53, %v296_v59 }
 0x18f   :  { %v457_v61 = vpop.eup %456 }
 0x190   :  { %v334_v2 = vmul.f32 %v457_v61, %v332_v52  ;;  %v301_v5 = vsel %vm300_vm10, %v455_v53, %v297_v35  ;;  %vm339_vm12 = vweird.f32 %v457_v61 }
 0x191   :  { %v306_v4 = vsel %vm303_vm11, %v305_v1, %v301_v5  ;;  %vm340_vm14 = vmor %vm338_vm13, %vm339_vm12 }
 0x192   :  { %v335_v6 = vsub.f32 1.0, %v334_v2  ;;  %v307_v7 = vmul.f32 %v306_v4, %v282_v3 }
 0x194   :  { %v336_v11 = vmul.f32 %v457_v61, %v335_v6  ;;  %v422_v14 = vclamps-f32 %v307_v7, 1.0 }
 0x196   :  { %v337_v15 = vadd.f32 %v457_v61, %v336_v11  ;;  %v350_v17 = vadd.f32 1.0, %v422_v14 }
 0x198   :  { %v341_v19 = vsel %vm340_vm14, %v457_v61, %v337_v15  ;;  %v352_v20 = vmul.f32 %v350_v17, %v266_v16 }
 0x199   :  { %v346_v21 = vsel %vm343_vm15, %v345_v18, %v341_v19 }
 0x19a   :  { %v347_v22 = vmul.f32 %v346_v21, %v322_v63  ;;  %390 = vmatmul.f32.vlgmr.msra.gmra.mxu2 %v352_v20 }
 0x19c   :  { %v423_v23 = vclamps-f32 %v347_v22, 1.0 }
 0x19e   :  { %v351_v25 = vadd.f32 1.0, %v423_v23 }
 0x1a0   :  { %v353_v27 = vmul.f32 %v351_v25, %v267_v24 }
 0x1a2   :  { %393 = vmatmul.f32.gmra.mxu2 %v353_v27 }
 0x21d   :  { %v391_v29 = vpop.f32.mrf.mxu2 }
 0x21e   :  { %v392_v30 = vadd.f32 %v449_v62, %v391_v29 }
 0x220   :  { %397 = vst [vmem:[#allocation10] sm:$0xff] %v392_v30 }
 0x225   :  { %v394_v12 = vpop.f32.mrf.mxu2 }
 0x226   :  { %v395_v31 = vadd.f32 %v449_v62, %v394_v12 }
 0x228   :  { %398 = vst [vmem:[#allocation10 + $0x8] sm:$0xff] %v395_v31 }
 0x229   :  { %411 = dma.vmem_to_hbm [thread:$0]  %s404_s24, 256, %s406_s27, [#allocation4], %s587_s9, %s587_s9, %s588_s10  }
 0x22a   :  { %584 = dma.done.wait [#allocation4], 256  }
 0x22b   :  { %585 = vsyncadd [#allocation4], 4294967040 }
 0x22c   :  { %416 = vsyncpa [#allocation3], 1 }
 0x22d   :  { %417 = vsyncpa [#allocation6], 1 }
 0x22e   :  { %418 = vsyncpa [#allocation9], 1 }
 0x22f   :  { %419 = vsyncpa [#allocation4], 1 }

// kernel: tpu_custom_call.1
= control target key start
LH: loop header
LB: loop body
LE: loop exit
PB: predicated region body
PF: predicated region fallthrough
CT: control target
= control target key end

     0   :  { %12 = vsyncpa [#allocation3], 0  ;;  %s708_s0 = inlined_call_operand.hbm [shape: f32[16,128], index: 0, kind: input, shape index: {}]   ;;  %s709_s1 = inlined_call_operand.hbm [shape: f32[128,128], index: 1, kind: input, shape index: {}]   ;;  %s710_s2 = inlined_call_operand.vmem [shape: f32[1,128], index: 2, kind: input, shape index: {}]   ;;  %s711_s3 = inlined_call_operand.hbm [shape: f32[128,128], index: 3, kind: input, shape index: {}]   ;;  %s712_s4 = inlined_call_operand.vmem [shape: f32[1,128], index: 4, kind: input, shape index: {}]   ;;  %s713_s5 = inlined_call_operand.hbm [shape: f32[128,128], index: 5, kind: input, shape index: {}]   ;;  %s714_s6 = inlined_call_operand.vmem [shape: f32[1,128], index: 6, kind: input, shape index: {}]   ;;  %s715_s7 = inlined_call_operand.hbm [shape: f32[16,128], index: 7, kind: output, shape index: {}]  }
   0x1   :  { %13 = vsyncpa [#allocation6], 0 }
   0x2   :  { %14 = vsyncpa [#allocation9], 0 }
   0x3   :  { %15 = vsyncpa [#allocation4], 0  ;;  %s33_s26 = sshll.u32 %s709_s1, 4  ;;  %s586_s27 = smov [#allocation5]   ;;  %s34_s26 = int_to_ptr.hbm [resolvable:$true] %s33_s26 }
   0x4   :  { %s35_s28 = sshll.u32 %s586_s27, 4  ;;  %s20_s8 = sshll.u32 %s708_s0, 4  ;;  %s36_s28 = int_to_ptr.vmem [resolvable:$true] %s35_s28  ;;  %s21_s8 = int_to_ptr.hbm [resolvable:$true] %s20_s8 }
   0x5   :  { %s587_s9 = smov 128   ;;  %s588_s10 = smov 8  }
   0x6   :  { %41 = dma.hbm_to_vmem [thread:$0]  %s34_s26, 2048, %s36_s28, [#allocation6], %s587_s9, %s587_s9, %s588_s10  }
   0x7   :  { %s589_s11 = smov [#allocation2]   ;;  %s48_s1 = sshll.u32 %s711_s3, 4  ;;  %s49_s1 = int_to_ptr.hbm [resolvable:$true] %s48_s1 }
   0x8   :  { %s22_s12 = sshll.u32 %s589_s11, 4  ;;  %s63_s16 = sshll.u32 %s713_s5, 4  ;;  %s23_s12 = int_to_ptr.vmem [resolvable:$true] %s22_s12  ;;  %s64_s16 = int_to_ptr.hbm [resolvable:$true] %s63_s16 }
   0x9   :  { %28 = dma.hbm_to_vmem [thread:$0]  %s21_s8, 256, %s23_s12, [#allocation3], %s587_s9, %s587_s9, %s588_s10  }
   0xa   :  { %s590_s17 = smov [#allocation7]   ;;  %s591_s19 = smov [#allocation8]  }
   0xb   :  { %s50_s18 = sshll.u32 %s590_s17, 4  ;;  %s65_s3 = sshll.u32 %s591_s19, 4  ;;  %s51_s18 = int_to_ptr.vmem [resolvable:$true] %s50_s18  ;;  %s66_s3 = int_to_ptr.vmem [resolvable:$true] %s65_s3 }
   0xc   :  { %56 = dma.hbm_to_vmem [thread:$0]  %s49_s1, 2048, %s51_s18, [#allocation6], %s587_s9, %s587_s9, %s588_s10  }
   0xd   :  { %71 = dma.hbm_to_vmem [thread:$0]  %s64_s16, 2048, %s66_s3, [#allocation9], %s587_s9, %s587_s9, %s588_s10  }
   0xe   :  { %578 = dma.done.wait [#allocation3], 256  }
   0xf   :  { %579 = vsyncadd [#allocation3], 4294967040 }
  0x10   :  { %580 = dma.done.wait [#allocation6], 4096  }
  0x11   :  { %581 = vsyncadd [#allocation6], 4294963200 }
  0x12   :  { %582 = dma.done.wait [#allocation9], 2048  }
  0x13   :  { %583 = vsyncadd [#allocation9], 4294965248  ;;  %v107_v0 = vld [vmem:[#allocation5 + $0x78] sm:$0xff]  ;;  %v106_v1 = vld [vmem:[#allocation5 + $0x70] sm:$0xff]  ;;  %s592_s23 = smov [#allocation10]   ;;  %s405_s27 = sshll.u32 %s715_s7, 4  ;;  %s406_s27 = int_to_ptr.hbm [resolvable:$true] %s405_s27 }
  0x14   :  { %112 = vmatpush.msra.mxu0 %v107_v0  ;;  %424 = vmatpush.msra.mxu3 %v107_v0  ;;  %v105_v2 = vld [vmem:[#allocation5 + $0x68] sm:$0xff]  ;;  %v104_v3 = vld [vmem:[#allocation5 + $0x60] sm:$0xff]  ;;  %v103_v4 = vld [vmem:[#allocation5 + $0x58] sm:$0xff]  ;;  %s403_s24 = sshll.u32 %s592_s23, 4  ;;  %s404_s24 = int_to_ptr.vmem [resolvable:$true] %s403_s24 }
  0x15   :  { %v102_v5 = vld [vmem:[#allocation5 + $0x50] sm:$0xff]  ;;  %v101_v6 = vld [vmem:[#allocation5 + $0x48] sm:$0xff]  ;;  %v100_v7 = vld [vmem:[#allocation5 + $0x40] sm:$0xff] }
  0x16   :  { %113 = vmatpush.msra.mxu0 %v106_v1  ;;  %425 = vmatpush.msra.mxu3 %v106_v1  ;;  %v99_v8 = vld [vmem:[#allocation5 + $0x38] sm:$0xff]  ;;  %v98_v9 = vld [vmem:[#allocation5 + $0x30] sm:$0xff]  ;;  %v97_v10 = vld [vmem:[#allocation5 + $0x28] sm:$0xff] }
  0x17   :  { %v96_v11 = vld [vmem:[#allocation5 + $0x20] sm:$0xff]  ;;  %v95_v12 = vld [vmem:[#allocation5 + $0x18] sm:$0xff]  ;;  %v94_v13 = vld [vmem:[#allocation5 + $0x10] sm:$0xff] }
  0x18   :  { %114 = vmatpush.msra.mxu0 %v105_v2  ;;  %426 = vmatpush.msra.mxu3 %v105_v2  ;;  %v93_v14 = vld [vmem:[#allocation5 + $0x8] sm:$0xff]  ;;  %v92_v15 = vld [vmem:[#allocation5] sm:$0xff]  ;;  %v90_v16 = vld [vmem:[#allocation2] sm:$0xff] }
  0x19   :  { %v91_v17 = vld [vmem:[#allocation2 + $0x8] sm:$0xff]  ;;  %v237_v19 = vld [vmem:[#allocation7 + $0x70] sm:$0xff]  ;;  %v236_v20 = vld [vmem:[#allocation7 + $0x68] sm:$0xff] }
  0x1a   :  { %115 = vmatpush.msra.mxu0 %v104_v3  ;;  %427 = vmatpush.msra.mxu3 %v104_v3  ;;  %v238_v18 = vld [vmem:[#allocation7 + $0x78] sm:$0xff]  ;;  %v235_v21 = vld [vmem:[#allocation7 + $0x60] sm:$0xff]  ;;  %v447_v22 = vld [vmem:[%s710_s2] ss:$0 sm:$0xff] }
  0x1b   :  { %243 = vmatpush.msra.mxu1 %v238_v18  ;;  %v234_v23 = vld [vmem:[#allocation7 + $0x58] sm:$0xff]  ;;  %v233_v25 = vld [vmem:[#allocation7 + $0x50] sm:$0xff]  ;;  %v232_v27 = vld [vmem:[#allocation7 + $0x48] sm:$0xff] }
  0x1c   :  { %116 = vmatpush.msra.mxu0 %v103_v4  ;;  %428 = vmatpush.msra.mxu3 %v103_v4  ;;  %v231_v29 = vld [vmem:[#allocation7 + $0x40] sm:$0xff]  ;;  %v230_v30 = vld [vmem:[#allocation7 + $0x38] sm:$0xff]  ;;  %v229_v33 = vld [vmem:[#allocation7 + $0x30] sm:$0xff] }
  0x1d   :  { %244 = vmatpush.msra.mxu1 %v237_v19  ;;  %v228_v36 = vld [vmem:[#allocation7 + $0x28] sm:$0xff]  ;;  %v227_v39 = vld [vmem:[#allocation7 + $0x20] sm:$0xff]  ;;  %v226_v43 = vld [vmem:[#allocation7 + $0x18] sm:$0xff] }
  0x1e   :  { %117 = vmatpush.msra.mxu0 %v102_v5  ;;  %429 = vmatpush.msra.mxu3 %v102_v5  ;;  %v225_v47 = vld [vmem:[#allocation7 + $0x10] sm:$0xff]  ;;  %v224_v52 = vld [vmem:[#allocation7 + $0x8] sm:$0xff]  ;;  %v223_v56 = vld [vmem:[#allocation7] sm:$0xff] }
  0x1f   :  { %245 = vmatpush.msra.mxu1 %v236_v20 }
  0x20   :  { %118 = vmatpush.msra.mxu0 %v101_v6  ;;  %430 = vmatpush.msra.mxu3 %v101_v6 }
  0x21   :  { %246 = vmatpush.msra.mxu1 %v235_v21 }
  0x22   :  { %119 = vmatpush.msra.mxu0 %v100_v7  ;;  %431 = vmatpush.msra.mxu3 %v100_v7 }
  0x23   :  { %247 = vmatpush.msra.mxu1 %v234_v23 }
  0x24   :  { %120 = vmatpush.msra.mxu0 %v99_v8  ;;  %432 = vmatpush.msra.mxu3 %v99_v8 }
  0x25   :  { %248 = vmatpush.msra.mxu1 %v233_v25 }
  0x26   :  { %121 = vmatpush.msra.mxu0 %v98_v9  ;;  %433 = vmatpush.msra.mxu3 %v98_v9 }
  0x27   :  { %249 = vmatpush.msra.mxu1 %v232_v27 }
  0x28   :  { %122 = vmatpush.msra.mxu0 %v97_v10  ;;  %434 = vmatpush.msra.mxu3 %v97_v10 }
  0x29   :  { %250 = vmatpush.msra.mxu1 %v231_v29 }
  0x2a   :  { %123 = vmatpush.msra.mxu0 %v96_v11  ;;  %435 = vmatpush.msra.mxu3 %v96_v11 }
  0x2b   :  { %251 = vmatpush.msra.mxu1 %v230_v30 }
  0x2c   :  { %124 = vmatpush.msra.mxu0 %v95_v12  ;;  %436 = vmatpush.msra.mxu3 %v95_v12 }
  0x2d   :  { %252 = vmatpush.msra.mxu1 %v229_v33 }
  0x2e   :  { %125 = vmatpush.msra.mxu0 %v94_v13  ;;  %437 = vmatpush.msra.mxu3 %v94_v13 }
  0x2f   :  { %253 = vmatpush.msra.mxu1 %v228_v36 }
  0x30   :  { %126 = vmatpush.msra.mxu0 %v93_v14  ;;  %438 = vmatpush.msra.mxu3 %v93_v14 }
  0x31   :  { %254 = vmatpush.msra.mxu1 %v227_v39 }
  0x32   :  { %127 = vmatpush.msra.mxu0 %v92_v15  ;;  %439 = vmatpush.msra.mxu3 %v92_v15 }
  0x33   :  { %128 = vmatmul.f32.vlgmr.msra.gmra.mxu0 %v90_v16  ;;  %131 = vmatmul.f32.vlgmr.msra.gmra.mxu3 %v91_v17 }
  0x34   :  { %255 = vmatpush.msra.mxu1 %v226_v43 }
  0x36   :  { %256 = vmatpush.msra.mxu1 %v225_v47 }
  0x38   :  { %257 = vmatpush.msra.mxu1 %v224_v52 }
  0x3a   :  { %258 = vmatpush.msra.mxu1 %v223_v56  ;;  %v369_v56 = vld [vmem:[#allocation8 + $0x78] sm:$0xff] }
  0x3b   :  { %374 = vmatpush.msra.mxu2 %v369_v56 }
  0xb0   :  { %v129_v24 = vpop.f32.mrf.mxu0 }
  0xb1   :  { %v660_v26 = vadd.f32 %v447_v22, %v129_v24 }
  0xb3   :  { %v663_v28 = vmul.f32 0.70710677, %v660_v26  ;;  %v135_v47 = vmul.f32 0.5, %v660_v26  ;;  %v448_v26 = vld [vmem:[%s712_s4] ss:$0 sm:$0xff] }
  0xb5   :  { %v139_v31 = vmul.f32 %v663_v28, %v663_v28 }
  0xb6   :  { %v132_v32 = vpop.f32.mrf.mxu3 }
  0xb7   :  { %v140_v34 = vmin.f32 %v139_v31, 16.0  ;;  %v667_v35 = vadd.f32 %v447_v22, %v132_v32 }
  0xb9   :  { %v141_v37 = vmul.f32 2.1237322e-06, %v140_v34  ;;  %v670_v38 = vmul.f32 0.70710677, %v667_v35  ;;  %v152_v40 = vmul.f32 3.8918573e-05, %v140_v34 }
  0xbb   :  { %v142_v41 = vadd.f32 0.00028619796, %v141_v37  ;;  %v179_v42 = vmul.f32 %v670_v38, %v670_v38  ;;  %v153_v44 = vadd.f32 0.001143296, %v152_v40 }
  0xbd   :  { %v143_v45 = vmul.f32 %v142_v41, %v140_v34  ;;  %v180_v46 = vmin.f32 %v179_v42, 16.0  ;;  %v154_v48 = vmul.f32 %v153_v44, %v140_v34 }
  0xbf   :  { %v181_v49 = vmul.f32 2.1237322e-06, %v180_v46  ;;  %v192_v50 = vmul.f32 3.8918573e-05, %v180_v46  ;;  %v144_v51 = vadd.f32 0.0036580483, %v143_v45 }
  0xc0   :  { %v155_v53 = vadd.f32 0.014752088, %v154_v48 }
  0xc1   :  { %v182_v54 = vadd.f32 0.00028619796, %v181_v49  ;;  %v193_v55 = vadd.f32 0.001143296, %v192_v50  ;;  %v145_v60 = vmul.f32 %v144_v51, %v140_v34 }
  0xc2   :  { %v156_v57 = vmul.f32 %v155_v53, %v140_v34 }
  0xc3   :  { %v183_v58 = vmul.f32 %v182_v54, %v180_v46  ;;  %v194_v59 = vmul.f32 %v193_v55, %v180_v46  ;;  %v146_v2 = vadd.f32 0.05243302, %v145_v60  ;;  %v136_v54 = vmul.f32 0.5, %v667_v35  ;;  %v363_v35 = vld [vmem:[#allocation8 + $0x48] sm:$0xff] }
  0xc4   :  { %v157_v61 = vadd.f32 0.112945676, %v156_v57  ;;  %v368_v57 = vld [vmem:[#allocation8 + $0x70] sm:$0xff] }
  0xc5   :  { %v184_v62 = vadd.f32 0.0036580483, %v183_v58  ;;  %v195_v63 = vadd.f32 0.014752088, %v194_v59  ;;  %v147_v8 = vmul.f32 %v146_v2, %v140_v34  ;;  %375 = vmatpush.msra.mxu2 %v368_v57  ;;  %v366_v58 = vld [vmem:[#allocation8 + $0x60] sm:$0xff]  ;;  %v365_v59 = vld [vmem:[#allocation8 + $0x58] sm:$0xff] }
  0xc6   :  { %v158_v0 = vmul.f32 %v157_v61, %v140_v34  ;;  %v364_v61 = vld [vmem:[#allocation8 + $0x50] sm:$0xff]  ;;  %v361_v2 = vld [vmem:[#allocation8 + $0x38] sm:$0xff] }
  0xc7   :  { %v196_v1 = vmul.f32 %v195_v63, %v180_v46  ;;  %v185_v4 = vmul.f32 %v184_v62, %v180_v46  ;;  %v148_v13 = vadd.f32 0.18741608, %v147_v8 }
  0xc8   :  { %v159_v3 = vadd.f32 0.4994258, %v158_v0  ;;  %v362_v0 = vld [vmem:[#allocation8 + $0x40] sm:$0xff] }
  0xc9   :  { %v197_v5 = vadd.f32 0.112945676, %v196_v1  ;;  %v186_v10 = vadd.f32 0.05243302, %v185_v4  ;;  %v149_v17 = vmul.f32 %v148_v13, %v140_v34  ;;  %v357_v13 = vld [vmem:[#allocation8 + $0x18] sm:$0xff] }
  0xca   :  { %v160_v6 = vmul.f32 %v159_v3, %v140_v34  ;;  %v360_v3 = vld [vmem:[#allocation8 + $0x30] sm:$0xff] }
  0xcb   :  { %v198_v7 = vmul.f32 %v197_v5, %v180_v46  ;;  %v187_v14 = vmul.f32 %v186_v10, %v180_v46  ;;  %v150_v21 = vadd.f32 1.1283791, %v149_v17  ;;  %v358_v10 = vld [vmem:[#allocation8 + $0x20] sm:$0xff]  ;;  %v356_v17 = vld [vmem:[#allocation8 + $0x10] sm:$0xff] }
  0xcc   :  { %v161_v9 = vadd.f32 1.0, %v160_v6  ;;  %v359_v6 = vld [vmem:[#allocation8 + $0x28] sm:$0xff] }
  0xcd   :  { %v199_v11 = vadd.f32 0.4994258, %v198_v7  ;;  %v188_v18 = vadd.f32 0.18741608, %v187_v14  ;;  %v151_v31 = vmul.f32 %v150_v21, %v663_v28 }
  0xce   :  { %450 = vrcp.f32 %v161_v9  ;;  %v173_v22 = vand.u32 2147483648, %v161_v9  ;;  %v171_v27 = vand.u32 2147483647, %v161_v9  ;;  %vm167_vm1 = vweird.f32 %v161_v9 }
  0xcf   :  { %v200_v12 = vmul.f32 %v199_v11, %v180_v46  ;;  %v189_v24 = vmul.f32 %v188_v18, %v180_v46 }
  0xd0   :  { %v174_v32 = vor.u32 1.1754944e-38, %v173_v22  ;;  %vm172_vm3 = vcmp.eq.f32.partialorder %v171_v27, 8.507059e+37 }
  0xd1   :  { %v201_v15 = vadd.f32 1.0, %v200_v12  ;;  %v190_v36 = vadd.f32 1.1283791, %v189_v24 }
  0xd3   :  { %452 = vrcp.f32 %v201_v15  ;;  %v213_v37 = vand.u32 2147483648, %v201_v15  ;;  %v211_v41 = vand.u32 2147483647, %v201_v15  ;;  %vm207_vm5 = vweird.f32 %v201_v15 }
  0xd4   :  { %v451_v16 = vpop.eup %450  ;;  %v191_v46 = vmul.f32 %v190_v36, %v670_v38  ;;  %v367_v38 = vld [vmem:[#allocation8 + $0x68] sm:$0xff] }
  0xd5   :  { %v163_v19 = vmul.f32 %v451_v16, %v161_v9  ;;  %vm168_vm0 = vweird.f32 %v451_v16  ;;  %v214_v45 = vor.u32 1.1754944e-38, %v213_v37  ;;  %vm212_vm7 = vcmp.eq.f32.partialorder %v211_v41, 8.507059e+37  ;;  %376 = vmatpush.msra.mxu2 %v367_v38 }
  0xd6   :  { %vm169_vm2 = vmor %vm167_vm1, %vm168_vm0 }
  0xd7   :  { %v164_v20 = vsub.f32 1.0, %v163_v19  ;;  %377 = vmatpush.msra.mxu2 %v366_v58 }
  0xd9   :  { %v453_v23 = vpop.eup %452  ;;  %v165_v25 = vmul.f32 %v451_v16, %v164_v20  ;;  %378 = vmatpush.msra.mxu2 %v365_v59  ;;  %v355_v20 = vld [vmem:[#allocation8 + $0x8] sm:$0xff] }
  0xda   :  { %v203_v29 = vmul.f32 %v453_v23, %v201_v15  ;;  %vm208_vm4 = vweird.f32 %v453_v23 }
  0xdb   :  { %v166_v30 = vadd.f32 %v451_v16, %v165_v25  ;;  %vm209_vm6 = vmor %vm207_vm5, %vm208_vm4  ;;  %379 = vmatpush.msra.mxu2 %v364_v61  ;;  %v354_v25 = vld [vmem:[#allocation8] sm:$0xff] }
  0xdc   :  { %v204_v33 = vsub.f32 1.0, %v203_v29 }
  0xdd   :  { %v170_v34 = vsel %vm169_vm2, %v451_v16, %v166_v30  ;;  %380 = vmatpush.msra.mxu2 %v363_v35 }
  0xde   :  { %v175_v39 = vsel %vm172_vm3, %v174_v32, %v170_v34  ;;  %v205_v40 = vmul.f32 %v453_v23, %v204_v33 }
  0xdf   :  { %v176_v42 = vmul.f32 %v175_v39, %v151_v31  ;;  %381 = vmatpush.msra.mxu2 %v362_v0 }
  0xe0   :  { %v206_v43 = vadd.f32 %v453_v23, %v205_v40 }
  0xe1   :  { %v420_v44 = vclamps-f32 %v176_v42, 1.0  ;;  %382 = vmatpush.msra.mxu2 %v361_v2 }
  0xe2   :  { %v210_v28 = vsel %vm209_vm6, %v453_v23, %v206_v43 }
  0xe3   :  { %v219_v48 = vadd.f32 1.0, %v420_v44  ;;  %v215_v49 = vsel %vm212_vm7, %v214_v45, %v210_v28  ;;  %383 = vmatpush.msra.mxu2 %v360_v3 }
  0xe4   :  { %v216_v50 = vmul.f32 %v215_v49, %v191_v46 }
  0xe5   :  { %v221_v51 = vmul.f32 %v219_v48, %v135_v47  ;;  %384 = vmatpush.msra.mxu2 %v359_v6 }
  0xe6   :  { %v421_v52 = vclamps-f32 %v216_v50, 1.0 }
  0xe7   :  { %259 = vmatmul.f32.vlgmr.msra.gmra.mxu1 %v221_v51  ;;  %385 = vmatpush.msra.mxu2 %v358_v10 }
  0xe8   :  { %v220_v53 = vadd.f32 1.0, %v421_v52 }
  0xe9   :  { %386 = vmatpush.msra.mxu2 %v357_v13 }
  0xea   :  { %v222_v55 = vmul.f32 %v220_v53, %v136_v54 }
  0xeb   :  { %387 = vmatpush.msra.mxu2 %v356_v17 }
  0xed   :  { %388 = vmatpush.msra.mxu2 %v355_v20 }
  0xef   :  { %262 = vmatmul.f32.gmra.mxu1 %v222_v55  ;;  %389 = vmatpush.msra.mxu2 %v354_v25 }
 0x164   :  { %v260_v60 = vpop.f32.mrf.mxu1 }
 0x165   :  { %v681_v62 = vadd.f32 %v448_v26, %v260_v60 }
 0x167   :  { %v684_v63 = vmul.f32 0.70710677, %v681_v62 }
 0x169   :  { %v270_v1 = vmul.f32 %v684_v63, %v684_v63 }
 0x16b   :  { %v271_v4 = vmin.f32 %v270_v1, 16.0 }
 0x16c   :  { %v263_v5 = vpop.f32.mrf.mxu1 }
 0x16d   :  { %v272_v7 = vmul.f32 2.1237322e-06, %v271_v4  ;;  %v688_v8 = vadd.f32 %v448_v26, %v263_v5  ;;  %v283_v9 = vmul.f32 3.8918573e-05, %v271_v4 }
 0x16f   :  { %v273_v11 = vadd.f32 0.00028619796, %v272_v7  ;;  %v691_v12 = vmul.f32 0.70710677, %v688_v8  ;;  %v284_v14 = vadd.f32 0.001143296, %v283_v9 }
 0x171   :  { %v274_v15 = vmul.f32 %v273_v11, %v271_v4  ;;  %v310_v16 = vmul.f32 %v691_v12, %v691_v12  ;;  %v285_v18 = vmul.f32 %v284_v14, %v271_v4 }
 0x173   :  { %v311_v19 = vmin.f32 %v310_v16, 16.0  ;;  %v286_v21 = vadd.f32 0.014752088, %v285_v18  ;;  %v275_v22 = vadd.f32 0.0036580483, %v274_v15  ;;  %v266_v16 = vmul.f32 0.5, %v681_v62 }
 0x174   :  { %v449_v62 = vld [vmem:[%s714_s6] ss:$0 sm:$0xff] }
 0x175   :  { %v312_v23 = vmul.f32 2.1237322e-06, %v311_v19  ;;  %v323_v24 = vmul.f32 3.8918573e-05, %v311_v19  ;;  %v287_v27 = vmul.f32 %v286_v21, %v271_v4  ;;  %v276_v32 = vmul.f32 %v275_v22, %v271_v4 }
 0x177   :  { %v313_v29 = vadd.f32 0.00028619796, %v312_v23  ;;  %v324_v30 = vadd.f32 0.001143296, %v323_v24  ;;  %v288_v31 = vadd.f32 0.112945676, %v287_v27 }
 0x178   :  { %v277_v41 = vadd.f32 0.05243302, %v276_v32  ;;  %v267_v24 = vmul.f32 0.5, %v688_v8 }
 0x179   :  { %v314_v33 = vmul.f32 %v313_v29, %v311_v19  ;;  %v325_v36 = vmul.f32 %v324_v30, %v311_v19  ;;  %v289_v34 = vmul.f32 %v288_v31, %v271_v4 }
 0x17a   :  { %v278_v28 = vmul.f32 %v277_v41, %v271_v4 }
 0x17b   :  { %v326_v37 = vadd.f32 0.014752088, %v325_v36  ;;  %v315_v39 = vadd.f32 0.0036580483, %v314_v33  ;;  %v290_v40 = vadd.f32 0.4994258, %v289_v34 }
 0x17c   :  { %v279_v50 = vadd.f32 0.18741608, %v278_v28 }
 0x17d   :  { %v327_v42 = vmul.f32 %v326_v37, %v311_v19  ;;  %v291_v43 = vmul.f32 %v290_v40, %v271_v4  ;;  %v316_v45 = vmul.f32 %v315_v39, %v311_v19 }
 0x17e   :  { %v280_v55 = vmul.f32 %v279_v50, %v271_v4 }
 0x17f   :  { %v328_v44 = vadd.f32 0.112945676, %v327_v42  ;;  %v292_v46 = vadd.f32 1.0, %v291_v43  ;;  %v317_v49 = vadd.f32 0.05243302, %v316_v45 }
 0x180   :  { %v281_v26 = vadd.f32 1.1283791, %v280_v55 }
 0x181   :  { %v329_v47 = vmul.f32 %v328_v44, %v311_v19  ;;  %454 = vrcp.f32 %v292_v46  ;;  %v318_v54 = vmul.f32 %v317_v49, %v311_v19  ;;  %v304_v58 = vand.u32 2147483648, %v292_v46 }
 0x182   :  { %v302_v60 = vand.u32 2147483647, %v292_v46  ;;  %vm298_vm9 = vweird.f32 %v292_v46  ;;  %v282_v3 = vmul.f32 %v281_v26, %v684_v63 }
 0x183   :  { %v330_v48 = vadd.f32 0.4994258, %v329_v47  ;;  %v319_v38 = vadd.f32 0.18741608, %v318_v54  ;;  %v305_v1 = vor.u32 1.1754944e-38, %v304_v58 }
 0x184   :  { %vm303_vm11 = vcmp.eq.f32.partialorder %v302_v60, 8.507059e+37 }
 0x185   :  { %v331_v51 = vmul.f32 %v330_v48, %v311_v19  ;;  %v320_v0 = vmul.f32 %v319_v38, %v311_v19 }
 0x187   :  { %v332_v52 = vadd.f32 1.0, %v331_v51  ;;  %v455_v53 = vpop.eup %454  ;;  %v321_v10 = vadd.f32 1.1283791, %v320_v0 }
 0x188   :  { %v294_v56 = vmul.f32 %v455_v53, %v292_v46  ;;  %vm299_vm8 = vweird.f32 %v455_v53 }
 0x189   :  { %456 = vrcp.f32 %v332_v52  ;;  %vm300_vm10 = vmor %vm298_vm9, %vm299_vm8  ;;  %v344_v9 = vand.u32 2147483648, %v332_v52  ;;  %v342_v13 = vand.u32 2147483647, %v332_v52  ;;  %vm338_vm13 = vweird.f32 %v332_v52 }
 0x18a   :  { %v295_v57 = vsub.f32 1.0, %v294_v56  ;;  %v322_v63 = vmul.f32 %v321_v10, %v691_v12 }
 0x18b   :  { %v345_v18 = vor.u32 1.1754944e-38, %v344_v9  ;;  %vm343_vm15 = vcmp.eq.f32.partialorder %v342_v13, 8.507059e+37 }
 0x18c   :  { %v296_v59 = vmul.f32 %v455_v53, %v295_v57 }
 0x18e   :  { %v297_v35 = vadd.f32 %v455_v53, %v296_v59 }
 0x18f   :  { %v457_v61 = vpop.eup %456 }
 0x190   :  { %v334_v2 = vmul.f32 %v457_v61, %v332_v52  ;;  %v301_v5 = vsel %vm300_vm10, %v455_v53, %v297_v35  ;;  %vm339_vm12 = vweird.f32 %v457_v61 }
 0x191   :  { %v306_v4 = vsel %vm303_vm11, %v305_v1, %v301_v5  ;;  %vm340_vm14 = vmor %vm338_vm13, %vm339_vm12 }
 0x192   :  { %v335_v6 = vsub.f32 1.0, %v334_v2  ;;  %v307_v7 = vmul.f32 %v306_v4, %v282_v3 }
 0x194   :  { %v336_v11 = vmul.f32 %v457_v61, %v335_v6  ;;  %v422_v14 = vclamps-f32 %v307_v7, 1.0 }
 0x196   :  { %v337_v15 = vadd.f32 %v457_v61, %v336_v11  ;;  %v350_v17 = vadd.f32 1.0, %v422_v14 }
 0x198   :  { %v341_v19 = vsel %vm340_vm14, %v457_v61, %v337_v15  ;;  %v352_v20 = vmul.f32 %v350_v17, %v266_v16 }
 0x199   :  { %v346_v21 = vsel %vm343_vm15, %v345_v18, %v341_v19 }
 0x19a   :  { %v347_v22 = vmul.f32 %v346_v21, %v322_v63  ;;  %390 = vmatmul.f32.vlgmr.msra.gmra.mxu2 %v352_v20 }
 0x19c   :  { %v423_v23 = vclamps-f32 %v347_v22, 1.0 }
 0x19e   :  { %v351_v25 = vadd.f32 1.0, %v423_v23 }
 0x1a0   :  { %v353_v27 = vmul.f32 %v351_v25, %v267_v24 }
 0x1a2   :  { %393 = vmatmul.f32.gmra.mxu2 %v353_v27 }
 0x21d   :  { %v391_v29 = vpop.f32.mrf.mxu2 }
 0x21e   :  { %v392_v30 = vadd.f32 %v449_v62, %v391_v29 }
 0x220   :  { %397 = vst [vmem:[#allocation10] sm:$0xff] %v392_v30 }
 0x225   :  { %v394_v12 = vpop.f32.mrf.mxu2 }
 0x226   :  { %v395_v31 = vadd.f32 %v449_v62, %v394_v12 }
 0x228   :  { %398 = vst [vmem:[#allocation10 + $0x8] sm:$0xff] %v395_v31 }
 0x229   :  { %411 = dma.vmem_to_hbm [thread:$0]  %s404_s24, 256, %s406_s27, [#allocation4], %s587_s9, %s587_s9, %s588_s10  }
 0x22a   :  { %584 = dma.done.wait [#allocation4], 256  }
 0x22b   :  { %585 = vsyncadd [#allocation4], 4294967040 }
 0x22c   :  { %416 = vsyncpa [#allocation3], 1 }
 0x22d   :  { %417 = vsyncpa [#allocation6], 1 }
 0x22e   :  { %418 = vsyncpa [#allocation9], 1 }
 0x22f   :  { %419 = vsyncpa [#allocation4], 1 }

</bundles_post_ra>
